<compile_context>
chip_gen: v7x
topology: tpu7x:2x2x1
jax: 0.10.0
libtpu: 0.0.40
codegen_flags: <defaults>
</compile_context>

<pallas_src>
import functools
import numpy as np
import jax
import jax.numpy as jnp
from jax.experimental import pallas as pl
from jax.experimental.pallas import tpu as pltpu


def orthonormal_initializer(output_size, input_size):
    """Same algorithm as the reference (Timothy Dozat), deterministic via np.random.seed."""
    I = np.eye(output_size)
    lr = 0.1
    eps = 0.05 / (output_size + input_size)
    success = False
    tries = 0
    while not success and tries < 10:
        Q = np.random.randn(input_size, output_size) / np.sqrt(output_size)
        for i in range(100):
            QTQmI = Q.T.dot(Q) - I
            loss = np.sum(QTQmI ** 2 / 2)
            Q2 = Q ** 2
            Q -= lr * Q.dot(QTQmI) / (
                np.abs(Q2 + Q2.sum(axis=0, keepdims=True) + Q2.sum(axis=1, keepdims=True) - 1) + eps)
            if np.max(Q) > 1e6 or loss > 1e6 or (not np.isfinite(loss)):
                tries += 1
                lr /= 2
                break
        success = True
    if not success:
        Q = np.random.randn(input_size, output_size) / np.sqrt(output_size)
    return np.transpose(Q.astype(np.float32))


def _round_up(x, m):
    return (x + m - 1) // m * m


def _identity(y):
    return y


def _vmem_budget_bytes():
    """Generation-aware VMEM budget (leave ~30% headroom for compiler scratch)."""
    try:
        cap = int(pltpu.get_tpu_info().vmem_capacity_bytes)
    except Exception:
        cap = 64 << 20          # conservative fallback = v7x per-TC capacity; safe everywhere
    return int(0.7 * cap)


def _choose_k_tiles(K, tk_max):
    """Pick a K tile, avoiding any padding when possible. Returns (tk_eff, Kp)."""
    if K <= tk_max:
        return K, K             # full-K block: block dim == array dim bypasses the 128 rule
    Kp = _round_up(K, 128)      # pad (only if K % 128 != 0) to the next lane multiple
    tk_eff = 128
    t = 256
    while t <= tk_max:
        if Kp % t == 0:
            tk_eff = t
        t += 128
    return tk_eff, Kp


# ----------------------------- kernels -----------------------------

def _kernel_single(x_ref, w_ref, b_ref, o_ref, *, activation):
    # One full-K dot per grid step (weight-resident path / single-K-tile path).
    y = jnp.dot(x_ref[...], w_ref[...], preferred_element_type=jnp.float32)
    y = y + b_ref[...].astype(jnp.float32)
    o_ref[...] = activation(y).astype(o_ref.dtype)


def _kernel_acc_inplace(x_ref, w_ref, b_ref, o_ref, *, activation):
    # f32 output: accumulate directly into the VMEM-resident output block (no scratch).
    k = pl.program_id(2)

    @pl.when(k == 0)
    def _():
        o_ref[...] = jnp.zeros_like(o_ref)

    o_ref[...] += jnp.dot(x_ref[...], w_ref[...], preferred_element_type=jnp.float32)

    @pl.when(k == pl.num_programs(2) - 1)
    def _():
        o_ref[...] = activation(o_ref[...] + b_ref[...].astype(jnp.float32)).astype(o_ref.dtype)


def _kernel_acc_scratch(x_ref, w_ref, b_ref, o_ref, acc_ref, *, activation):
    # Non-f32 output: f32 VMEM accumulator, cast only at the last K step.
    k = pl.program_id(2)

    @pl.when(k == 0)
    def _():
        acc_ref[...] = jnp.zeros_like(acc_ref)

    acc_ref[...] += jnp.dot(x_ref[...], w_ref[...], preferred_element_type=jnp.float32)

    @pl.when(k == pl.num_programs(2) - 1)
    def _():
        y = acc_ref[...] + b_ref[...].astype(jnp.float32)
        o_ref[...] = activation(y).astype(o_ref.dtype)


# ----------------------------- wrapper -----------------------------

def nolinear_forward(x, weight, bias=None, *, activation=None,
                     tm=512, tn=512, tk=1024,
                     compute_dtype=jnp.bfloat16,
                     allow_weight_resident=True):
    """NoLinear forward: activation(x @ weight.T + bias).

    x:      (..., input_size)
    weight: (hidden_size, input_size)   -- PyTorch nn.Linear layout
    bias:   (hidden_size,) or None
    activation: optional elementwise callable, fused into the kernel epilogue.
    compute_dtype: MXU input dtype (bf16 default, f32 accumulation). Use jnp.float32
                   (or None to keep x's dtype) for a full-precision path.
    """
    orig_shape = x.shape
    out_dtype = x.dtype
    N, K = weight.shape
    assert orig_shape[-1] == K, "last dim of x must equal input_size"

    x2d = x.reshape(-1, K)
    M = x2d.shape[0]

    if activation is None:
        activation = _identity
    if bias is None:
        bias = jnp.zeros((N,), dtype=jnp.float32)
    b2d = bias.reshape(1, N).astype(jnp.float32)

    if compute_dtype is None:
        compute_dtype = x2d.dtype
    # One-time (K, N) layout + cast: the kernel contracts (1, 0), no weight transpose inside.
    wt = weight.T.astype(compute_dtype)
    x2d = x2d.astype(compute_dtype)

    in_item = jnp.dtype(compute_dtype).itemsize
    out_item = jnp.dtype(out_dtype).itemsize
    budget = _vmem_budget_bytes()

    has_act = activation is not _identity
    transc = M * N if has_act else 0

    # -------- Path A: weight-resident, single full-K dot per M tile --------
    if allow_weight_resident:
        tm_a = M if M <= tm else max(8, (tm // 8) * 8)
        grid_m = pl.cdiv(M, tm_a)
        if grid_m < 2 and M >= 16:          # v7x megacore: expose >= 2 parallel blocks
            tm_a = _round_up((M + 1) // 2, 8)
            grid_m = pl.cdiv(M, tm_a)
        need_a = (2 * tm_a * K * in_item        # x row tile (double-buffered)
                  + 2 * K * N * in_item         # resident weight
                  + 2 * tm_a * N * out_item     # output tile (double-buffered)
                  + 2 * N * 4)                  # bias
        if need_a <= int(0.6 * budget):
            cost = pl.CostEstimate(
                flops=2 * M * N * K,
                transcendentals=transc,
                bytes_accessed=int(M * K * in_item + K * N * in_item
                                   + N * 4 + M * N * out_item))
            out = pl.pallas_call(
                functools.partial(_kernel_single, activation=activation),
                out_shape=jax.ShapeDtypeStruct((M, N), out_dtype),
                grid_spec=pltpu.PrefetchScalarGridSpec(
                    num_scalar_prefetch=0,
                    grid=(grid_m,),
                    in_specs=[
                        pl.BlockSpec((tm_a, K), lambda i: (i, 0)),   # x rows, full K
                        pl.BlockSpec((K, N), lambda i: (0, 0)),      # weight: fetched once
                        pl.BlockSpec((1, N), lambda i: (0, 0)),      # bias: fetched once
                    ],
                    out_specs=pl.BlockSpec((tm_a, N), lambda i: (i, 0)),
                ),
                compiler_params=pltpu.CompilerParams(
                    dimension_semantics=("parallel",),
                    vmem_limit_bytes=int(min(budget, max(2 * need_a, 32 << 20)))),
                cost_estimate=cost,
            )(x2d, wt, b2d)
            return out.reshape(orig_shape[:-1] + (N,))

    # -------- Path B: general tiled matmul --------
    tk_eff, Kp = _choose_k_tiles(K, tk)
    tm_b = M if M <= tm else max(8, (tm // 8) * 8)
    tn_b = N if N <= tn else max(128, (tn // 128) * 128)

    grid_m = pl.cdiv(M, tm_b)
    grid_n = pl.cdiv(N, tn_b)
    if grid_m * grid_n < 2:                     # v7x megacore utilization
        if M >= 16:
            tm_b = _round_up((M + 1) // 2, 8)
        elif N >= 256:
            tn_b = _round_up((N + 1) // 2, 128)
        grid_m = pl.cdiv(M, tm_b)
        grid_n = pl.cdiv(N, tn_b)
    grid_k = Kp // tk_eff

    # Zero-pad along K only (garbage along the contraction axis would corrupt outputs).
    # M/N edges use Pallas masked blocks: no padded copies, no output slice.
    if Kp != K:
        x2d = jnp.pad(x2d, ((0, 0), (0, Kp - K)))
        wt = jnp.pad(wt, ((0, Kp - K), (0, 0)))

    if grid_k == 1:
        grid = (grid_m, grid_n)
        kernel = functools.partial(_kernel_single, activation=activation)
        in_specs = [
            pl.BlockSpec((tm_b, tk_eff), lambda i, j: (i, 0)),
            pl.BlockSpec((tk_eff, tn_b), lambda i, j: (0, j)),
            pl.BlockSpec((1, tn_b), lambda i, j: (0, j)),
        ]
        out_spec = pl.BlockSpec((tm_b, tn_b), lambda i, j: (i, j))
        scratch = []
        dims = ("parallel", "parallel")
    else:
        grid = (grid_m, grid_n, grid_k)
        if out_dtype == jnp.float32:
            kernel = functools.partial(_kernel_acc_inplace, activation=activation)
            scratch = []
        else:
            kernel = functools.partial(_kernel_acc_scratch, activation=activation)
            scratch = [pltpu.VMEM((tm_b, tn_b), jnp.float32)]
        in_specs = [
            pl.BlockSpec((tm_b, tk_eff), lambda i, j, k: (i, k)),
            pl.BlockSpec((tk_eff, tn_b), lambda i, j, k: (k, j)),
            pl.BlockSpec((1, tn_b), lambda i, j, k: (0, j)),
        ]
        out_spec = pl.BlockSpec((tm_b, tn_b), lambda i, j, k: (i, j))
        dims = ("parallel", "parallel", "arbitrary")

    need_b = (2 * tm_b * tk_eff * in_item
              + 2 * tk_eff * tn_b * in_item
              + 2 * tm_b * tn_b * out_item
              + (tm_b * tn_b * 4 if scratch else 0)
              + 2 * tn_b * 4)
    vmem_limit = int(min(budget, max(2 * need_b, 64 << 20)))

    cost = pl.CostEstimate(
        flops=2 * M * N * Kp,
        transcendentals=transc,
        bytes_accessed=int(M * Kp * in_item * grid_n       # x re-streamed per N tile
                           + Kp * N * in_item * grid_m     # W re-streamed per M tile
                           + N * 4 * grid_m
                           + M * N * out_item))

    out = pl.pallas_call(
        kernel,
        out_shape=jax.ShapeDtypeStruct((M, N), out_dtype),
        grid_spec=pltpu.PrefetchScalarGridSpec(
            num_scalar_prefetch=0,
            grid=grid,
            in_specs=in_specs,
            out_specs=out_spec,
            scratch_shapes=scratch,
        ),
        compiler_params=pltpu.CompilerParams(
            dimension_semantics=dims,
            vmem_limit_bytes=vmem_limit),
        cost_estimate=cost,
    )(x2d, wt, b2d)
    return out.reshape(orig_shape[:-1] + (N,))


if __name__ == "__main__":
    # Small shapes implied by the module: a batch of sequences of feature vectors.
    batch, seq, input_size, hidden_size = 2, 8, 32, 32

    # Deterministic parameter init (orthonormal weight, zero bias), as in reset_parameters().
    np.random.seed(0)
    W_np = orthonormal_initializer(hidden_size, input_size)   # (hidden, input)
    b_np = np.zeros(hidden_size, dtype=np.float32)
    weight = jnp.asarray(W_np)
    bias = jnp.asarray(b_np)

    key = jax.random.PRNGKey(0)
    x = jax.random.normal(key, (batch, seq, input_size), dtype=jnp.float32)
    y_ref = x @ weight.T + bias

    # 1) Weight-resident path, full f32 precision (escape hatch) -> tight check.
    y_f32 = jax.block_until_ready(nolinear_forward(x, weight, bias, compute_dtype=jnp.float32))
    assert y_f32.shape == (batch, seq, hidden_size)
    np.testing.assert_allclose(np.asarray(y_f32), np.asarray(y_ref), rtol=1e-5, atol=1e-5)

    # 2) Default bf16 compute -> loose check.
    y_bf = jax.block_until_ready(nolinear_forward(x, weight, bias))
    np.testing.assert_allclose(np.asarray(y_bf), np.asarray(y_ref), rtol=5e-2, atol=5e-2)

    # 3) Fused activation (NoLinear(activation=torch.tanh) equivalent), bf16.
    y_act = jax.block_until_ready(nolinear_forward(x, weight, bias, activation=jnp.tanh))
    np.testing.assert_allclose(np.asarray(y_act), np.asarray(jnp.tanh(y_ref)),
                               rtol=5e-2, atol=5e-2)

    # 4) bias=False path (zeros added internally), f32.
    y_nb = jax.block_until_ready(nolinear_forward(x, weight, None, compute_dtype=jnp.float32))
    np.testing.assert_allclose(np.asarray(y_nb), np.asarray(x @ weight.T), rtol=1e-5, atol=1e-5)

    # 5) General tiled path with a multi-step K reduction (small shapes, forced):
    #    in-place f32 accumulation kernel + f32-scratch kernel (bf16 output).
    np.random.seed(1)
    in2, hid2, b2, s2 = 384, 64, 3, 16
    W2 = jnp.asarray(orthonormal_initializer(hid2, in2))
    bias2 = jnp.asarray(np.zeros(hid2, dtype=np.float32))
    x2 = jax.random.normal(jax.random.PRNGKey(1), (b2, s2, in2), dtype=jnp.float32)
    y2_ref = x2 @ W2.T + bias2

    y2 = jax.block_until_ready(
        nolinear_forward(x2, W2, bias2, compute_dtype=jnp.float32,
                         allow_weight_resident=False, tk=128))
    np.testing.assert_allclose(np.asarray(y2), np.asarray(y2_ref), rtol=1e-5, atol=1e-5)

    y2b = jax.block_until_ready(
        nolinear_forward(x2.astype(jnp.bfloat16), W2, bias2,
                         allow_weight_resident=False, tk=128))
    np.testing.assert_allclose(np.asarray(y2b).astype(np.float32), np.asarray(y2_ref),
                               rtol=5e-2, atol=5e-2)

    print("KERNEL_OK")
</pallas_src>

<mosaic_0001>
module attributes {stable_mosaic.version = 11 : i64} {
  func.func @_kernel_single(%arg0: i32, %arg1: memref<8x32xf32, #tpu.memory_space<vmem>>, %arg2: memref<32x32xf32, #tpu.memory_space<vmem>>, %arg3: memref<1x32xf32, #tpu.memory_space<vmem>>, %arg4: memref<8x32xf32, #tpu.memory_space<vmem>>) attributes {dimension_semantics = [#tpu.dimension_semantics<parallel>], iteration_bounds = array<i64: 2>, scalar_prefetch = 0 : i64, scratch_operands = 0 : i64, tpu.core_type = #tpu.core_type<tc>, window_params = [{transform_indices = @transform_0, window_bounds = array<i64: 8, 32>}, {pipeline_mode = #tpu.pipeline_mode<synchronous>, transform_indices = @transform_1, window_bounds = array<i64: 32, 32>}, {pipeline_mode = #tpu.pipeline_mode<synchronous>, transform_indices = @transform_2, window_bounds = array<i64: 1, 32>}, {transform_indices = @transform_3, window_bounds = array<i64: 8, 32>}]} {
    %c0 = arith.constant 0 : index
    %c0_0 = arith.constant 0 : index
    %0 = vector.load %arg1[%c0, %c0_0] : memref<8x32xf32, #tpu.memory_space<vmem>>, vector<8x32xf32>
    %c0_1 = arith.constant 0 : index
    %c0_2 = arith.constant 0 : index
    %1 = vector.load %arg2[%c0_1, %c0_2] : memref<32x32xf32, #tpu.memory_space<vmem>>, vector<32x32xf32>
    %cst = arith.constant dense<0.000000e+00> : vector<8x32xf32>
    %2 = tpu.matmul %0, %1, %cst {dimension_numbers = #tpu.dot_dimension_numbers<[1], [0], [0], [1], [0, 0, 1, 1], [], []>} : vector<8x32xf32>, vector<32x32xf32>, vector<8x32xf32> -> vector<8x32xf32>
    %c0_3 = arith.constant 0 : index
    %c0_4 = arith.constant 0 : index
    %3 = vector.load %arg3[%c0_3, %c0_4] : memref<1x32xf32, #tpu.memory_space<vmem>>, vector<1x32xf32>
    %4 = vector.broadcast %3 : vector<1x32xf32> to vector<8x32xf32>
    %5 = arith.addf %2, %4 : vector<8x32xf32>
    %c0_5 = arith.constant 0 : index
    %c0_6 = arith.constant 0 : index
    %6 = vector.load %arg4[%c0_5, %c0_6] : memref<8x32xf32, #tpu.memory_space<vmem>>, vector<8x32xf32>
    tpu.vector_store %arg4[%c0_5, %c0_6], %5 {strides = array<i32>} : memref<8x32xf32, #tpu.memory_space<vmem>>, vector<8x32xf32>,
    return
  }
  func.func @transform_0(%arg0: i32) -> (i32, i32) {
    %c0_i32 = arith.constant 0 : i32
    %c0_i32_0 = arith.constant 0 : i32
    return %arg0, %c0_i32 : i32, i32
  }
  func.func @transform_1(%arg0: i32) -> (i32, i32) {
    %c0_i32 = arith.constant 0 : i32
    %c0_i32_0 = arith.constant 0 : i32
    %c0_i32_1 = arith.constant 0 : i32
    return %c0_i32, %c0_i32_0 : i32, i32
  }
  func.func @transform_2(%arg0: i32) -> (i32, i32) {
    %c0_i32 = arith.constant 0 : i32
    %c0_i32_0 = arith.constant 0 : i32
    %c0_i32_1 = arith.constant 0 : i32
    return %c0_i32, %c0_i32_0 : i32, i32
  }
  func.func @transform_3(%arg0: i32) -> (i32, i32) {
    %c0_i32 = arith.constant 0 : i32
    %c0_i32_0 = arith.constant 0 : i32
    return %arg0, %c0_i32 : i32, i32
  }
}

</mosaic_0001>

<bundles_post_ra>
// kernel: tpu_custom_call.1
= control target key start
LH: loop header
LB: loop body
LE: loop exit
PB: predicated region body
PF: predicated region fallthrough
CT: control target
= control target key end

     0   :  { %8 = vsyncpa [#allocation3], 0  ;;  %s839_s0 = inlined_call_operand.hbm [shape: f32[16,32], index: 0, kind: input, shape index: {}]   ;;  %s840_s1 = inlined_call_operand.hbm [shape: f32[32,32], index: 1, kind: input, shape index: {}]   ;;  %s841_s2 = inlined_call_operand.vmem [shape: f32[1,32], index: 2, kind: input, shape index: {}]   ;;  %s842_s3 = inlined_call_operand.hbm [shape: f32[16,32], index: 3, kind: output, shape index: {}]  }
   0x1   :  { %10 = vsyncpa [#allocation3 + $0x1], 0 }
   0x2   :  { %11 = vsyncpa [#allocation6], 0 }
   0x3   :  { %12 = vsyncpa [#allocation4], 0 }
   0x4   :  { %14 = vsyncpa [#allocation4 + $0x1], 0  ;;  %s640_s12 = smov 0   ;;  %s642_s13 = smov 0  }
   0x5   :  { %s644_s14 = smov 0   ;;  %s646_s15 = smov 0  }
   0x6 LB: > { %s661_s16 = sadd.s32 4294967295, %s610_s15   ;;  %s382_s17 = sadd.s32 4294967294, %s610_s15   ;;  %s610_s15 = sphi %s646_s15, %s862_s15   ;;  %s606_s14 = sphi %s644_s14, %s861_s14   ;;  %s602_s13 = sphi %s642_s13, %s860_s13   ;;  %s598_s12 = sphi %s640_s12, %s859_s12  }
   0x7   : > { %p40_p0 = scmp.ne.s32.totalorder %s602_s13, %s598_s12  ;;  %p843_p1 = scmp.eq.s32.totalorder %s661_s16, 0 }
   0x8   : > { %p112_p3 = scmp.eq.s32.totalorder %s382_s17, 1  ;;  %p383_p5 = scmp.ge.s32.totalorder %s610_s15, 1 }
   0x9   : > { %p670_p4 = por %p843_p1, %p40_p0  ;;  %p119_p7 = scmp.lt.s32.totalorder %s610_s15, 3 }
   0xa   : > { %p675_p6 = por %p112_p3, %p40_p0  ;;  %s612_s21 = smov [#allocation5]  }
   0xb   : > { %s846_s18 = scalar_select %p670_p4, 1, 0 }
   0xc   : > { %s847_s19 = scalar_select %p675_p6, 1, 0 }
   0xd   : > { %p680_p8 = pnand %p383_p5, %p119_p7  ;;  %s131_s22 = sshll.u32 %s612_s21, 4  ;;  %s684_s22 = int_to_ptr.vmem [resolvable:$true] %s131_s22 }
   0xe   : > { %s696_s24 = sadd.s32 1, %s610_s15   ;;  %s27_s25 = sadd.s32 1, %s606_s14 }
   0xf   : > { %s848_s20 = scalar_select %p680_p8, 1, 0 }
  0x10   : > { %p428_p9 = pneg %p680_p8  ;;  %s24_s26 = ssub.s32 %s610_s15, %s696_s24 }
  0x11   : > { %s482_s29 = scalar_lea.hbm %s840_s1, 512 }
  0x12   : > { %p691_p11 = pnand %p428_p9, %p843_p1  ;;  %p483_p12 = scmp.ne.s32.totalorder %s840_s1, %s482_s29 }
  0x13   : > { %p489_p5 = scmp.lt.u32.totalorder %s482_s29, %s840_s1 }
  0x14   : > { %p484_p13 = pneg %p691_p11 }
  0x16   : > { %p485_p0 = pnand %p484_p13, %p483_p12 }
  0x18   : > { %p486_p3 = pneg %p485_p0 }
  0x1a   : > { %p491_p7 = pnand %p489_p5, %p486_p3 }
  0x1c   : > { %494 = shalt.err (!%p491_p7)
}
  0x1d   : > { %s495_s7 = scalar_lea.vmem %s684_s22, 512  ;;  %p503_p2 = scmp.lt.s32.totalorder %s684_s22, %s684_s22 }
  0x1e   : > { %p496_p9 = scmp.ne.s32.totalorder %s684_s22, %s495_s7  ;;  %p504_p6 = scmp.lt.s32.totalorder %s495_s7, %s495_s7 }
  0x20   : > { %p498_p10 = pnand %p496_p9, %p484_p13  ;;  %p505_p4 = por %p504_p6, %p503_p2 }
  0x22   : > { %p499_p1 = pneg %p498_p10 }
  0x24   : > { %p506_p8 = pnand %p505_p4, %p499_p1 }
  0x26   : > { %509 = shalt.err (!%p506_p8)
}
  0x27   : > { %s613_s8 = smov 128   ;;  %s614_s9 = smov 8  }
  0x28   : > { %431 = dma.hbm_to_vmem [thread:$0]  (!%p691_p11), %s840_s1, 512, %s684_s22, [#allocation6], %s613_s8, %s613_s8, %s614_s9  }
  0x29   : > { %p25_p2 = scmp.eq.s32.totalorder %s24_s26, 0  ;;  %p34_p1 = scmp.ne.s32.totalorder %s606_s14, %s602_s13 }
  0x2a   : > { %p35_p4 = scmp.eq.s32.totalorder %s610_s15, 0  ;;  %p441_p6 = scmp.lt.s32.totalorder %s610_s15, 2 }
  0x2b   : > { %s727_s17 = scalar_select %p25_p2, %s606_s14, %s27_s25  }
  0x2c   : > { %p36_p8 = por %p35_p4, %p34_p1  ;;  %p850_p10 = scmp.eq.s32.totalorder %s661_s16, 1 }
  0x2d   : > { %s148_s27 = sand.u32 1, %s606_s14   ;;  %s387_s28 = sshll.u32 %s610_s15, 7 }
  0x2e   : > { %p731_p12 = por %p850_p10, %p34_p1  ;;  %s386_s29 = sshll.u32 %s148_s27, 3 }
  0x2f   : > { %s740_s4 = scalar_lea.hbm %s839_s0, %s387_s28  ;;  %s152_s22 = scalar_lea.vmem [#allocation2], %s386_s29 }
  0x30   : > { %s159_s25 = sshll.u32 %s152_s22, 4  ;;  %p742_p11 = pnand %p441_p6, %p36_p8  ;;  %s746_s25 = int_to_ptr.vmem [resolvable:$true] %s159_s25 }
  0x31   : > { %s149_s5 = scalar_lea.sflag [#allocation3], %s148_s27  ;;  %s510_s6 = scalar_lea.hbm %s740_s4, 128 }
  0x32   : > { %p511_p13 = scmp.ne.s32.totalorder %s740_s4, %s510_s6  ;;  %p512_p0 = pneg %p742_p11 }
  0x33   : > { %s515_s9 = scalar_lea.hbm %s839_s0, 256  ;;  %p516_p7 = scmp.lt.u32.totalorder %s740_s4, %s839_s0 }
  0x34   : > { %p513_p3 = pnand %p512_p0, %p511_p13  ;;  %p517_p9 = scmp.lt.u32.totalorder %s515_s9, %s510_s6 }
  0x35   : > { %p519_p1 = scmp.lt.u32.totalorder %s510_s6, %s740_s4 }
  0x36   : > { %p514_p5 = pneg %p513_p3  ;;  %p518_p2 = por %p517_p9, %p516_p7 }
  0x38   : > { %p520_p4 = por %p519_p1, %p518_p2 }
  0x3a   : > { %p521_p6 = pnand %p520_p4, %p514_p5 }
  0x3c   : > { %524 = shalt.err (!%p521_p6)
}
  0x3d   : > { %s525_s27 = scalar_lea.vmem %s746_s25, 128  ;;  %s615_s28 = smov [#allocation2]  }
  0x3e   : > { %p526_p8 = scmp.ne.s32.totalorder %s746_s25, %s525_s27  ;;  %s530_s29 = sshll.u32 %s615_s28, 4  ;;  %s531_s29 = int_to_ptr.vmem [resolvable:$false] %s530_s29 }
  0x3f   : > { %s532_s23 = scalar_lea.vmem %s531_s29, 256  ;;  %p533_p3 = scmp.lt.s32.totalorder %s746_s25, %s531_s29 }
  0x40   : > { %p528_p10 = pnand %p526_p8, %p512_p0  ;;  %p534_p7 = scmp.lt.s32.totalorder %s532_s23, %s525_s27 }
  0x42   : > { %p529_p13 = pneg %p528_p10  ;;  %p535_p9 = por %p534_p7, %p533_p3 }
  0x44   : > { %p536_p2 = pnand %p535_p9, %p529_p13 }
  0x46   : > { %539 = shalt.err (!%p536_p2)
}
  0x47   : > { %435 = dma.hbm_to_vmem [thread:$0]  (!%p742_p11), %s740_s4, 128, %s746_s25, %s149_s5  }
  0x48   : > { %p853_p5 = scmp.ne.s32.totalorder %s848_s20, 0 }
  0x49   : > { %s776_s30 = sand.u32 (!%p853_p5), 1, %s602_s13   ;;  %p854_p0 = scmp.ne.s32.totalorder (!%p853_p5), %s846_s18, 0 }
  0x4a   : > { %168 = sbr.rel (%p853_p5) target bundleno = 323 (0x143), region = 32  ;;  %s389_s22 = sshll.u32 (!%p853_p5), %s776_s30, 3 }
  0x4b   : > { %s171_s6 = scalar_lea.sflag (!%p853_p5), [#allocation3], %s776_s30  ;;  %s174_s7 = scalar_lea.vmem (!%p853_p5), [#allocation2], %s389_s22 }
  0x51   : > { %585 = dma.done.wait (%p854_p0), %s171_s6, 128  }
  0x52   : > { %587 = vsyncadd (%p854_p0), %s171_s6, 4294967168  ;;  %p855_p1 = scmp.eq.s32.totalorder %s661_s16, 0 }
  0x54   : > { %589 = dma.done.wait (%p855_p1), [#allocation6], 512   ;;  %p856_p11 = pmov %p855_p1 }
  0x55   : > { %v616_v0 = vmov 0.0|0.0   ;;  %vm617_vm0 = vmmov 0   ;;  %v618_v1 = vmov 0.0   ;;  %v202_v2 = vld [vmem:[#allocation5] sm:$0xff]  ;;  %v203_v3 = vld [vmem:[#allocation5 + $0x8] sm:$0xff]  ;;  %v204_v4 = vld [vmem:[#allocation5 + $0x10] sm:$0xff] }
  0x56   : > { %591 = vsyncadd (%p856_p11), [#allocation6], 4294966784  ;;  %414 = vmatprep.subr.bf16.mxu0 %v616_v0  ;;  %411 = vmatprep.mubr.msk.f32.mxu0 %vm617_vm0, %v618_v1  ;;  %v415_v5 = vpack.c.bf16 %v203_v3, %v202_v2  ;;  %v205_v6 = vld [vmem:[#allocation5 + $0x18] sm:$0xff]  ;;  %vm213_vm1 = vcmask 261120   ;;  %v392_v9 = vld [vmem:[%s841_s2] ss:$0 sm:$0xff] }
  0x57   : > { %v418_v7 = vpack.c.bf16 %v205_v6, %v204_v4  ;;  %v201_v8 = vld [vmem:[%s174_s7] sm:$0xff]  ;;  %s395_s4 = sshll.u32 %s661_s16, 7  ;;  %s200_s25 = scalar_lea.vmem [#allocation7], %s389_s22 }
  0x58   : > { %416 = vmatpush3.bf16.msra.mxu0 %v415_v5  ;;  %s302_s26 = sshll.u32 %s200_s25, 4  ;;  %s795_s9 = scalar_lea.hbm %s842_s3, %s395_s4  ;;  %s797_s26 = int_to_ptr.vmem [resolvable:$true] %s302_s26 }
  0x59   : > { %417 = vmatprep.subr.bf16.mxu0 %v616_v0  ;;  %s289_s10 = scalar_lea.sflag [#allocation4], %s776_s30  ;;  %s540_s11 = scalar_lea.vmem %s797_s26, 128 }
  0x5a   : > { %p541_p4 = scmp.ne.s32.totalorder %s797_s26, %s540_s11  ;;  %s619_s16 = smov [#allocation7]  }
  0x5b   : > { %s544_s27 = sshll.u32 %s619_s16, 4  ;;  %s545_s27 = int_to_ptr.vmem [resolvable:$false] %s544_s27 }
  0x5c   : > { %419 = vmatpush3.bf16.msra.mxu0 %v418_v7  ;;  %p542_p6 = pnand %p541_p4, %p731_p12  ;;  %s546_s28 = scalar_lea.vmem %s545_s27, 256 }
  0x5d   : > { %p547_p10 = scmp.lt.s32.totalorder %s797_s26, %s545_s27  ;;  %p548_p13 = scmp.lt.s32.totalorder %s546_s28, %s540_s11 }
  0x5e   : > { %p543_p8 = pneg %p542_p6 }
  0x5f   : > { %412 = vmatmul.mubr.msk.f32.vlgmr.msra.gmra.mrb[0].mxu0 %vm213_vm1, %v201_v8  ;;  %p549_p3 = por %p548_p13, %p547_p10 }
  0x61   : > { %p550_p7 = pnand %p549_p3, %p543_p8 }
 0x132   : > { %v283_v10 = vpop.f32.mrb[0].mxu0 }
 0x133   : > { %v284_v11 = vadd.f32 %v392_v9, %v283_v10  ;;  %v413_v12 = vpop.f32.mrb[1].mxu0 }
 0x135   : > { %287 = vst.msk [vmem:[%s200_s25] sm:$0xff] %vm213_vm1, %v284_v11 }
 0x136   : > { %553 = shalt.err (!%p550_p7)
}
 0x137   : > { %s554_s29 = scalar_lea.hbm %s795_s9, 128  ;;  %s558_s22 = scalar_lea.hbm %s842_s3, 256 }
 0x138   : > { %p555_p9 = scmp.ne.s32.totalorder %s795_s9, %s554_s29  ;;  %p559_p0 = scmp.lt.u32.totalorder %s795_s9, %s842_s3 }
 0x139   : > { %p560_p1 = scmp.lt.u32.totalorder %s558_s22, %s554_s29  ;;  %p562_p4 = scmp.lt.u32.totalorder %s554_s29, %s795_s9 }
 0x13a   : > { %p556_p2 = pnand %p555_p9, %p731_p12 }
 0x13b   : > { %p561_p11 = por %p560_p1, %p559_p0 }
 0x13c   : > { %p557_p5 = pneg %p556_p2 }
 0x13d   : > { %p563_p6 = por %p562_p4, %p561_p11 }
 0x13f   : > { %p564_p8 = pnand %p563_p6, %p557_p5 }
 0x141   : > { %567 = shalt.err (!%p564_p8)
}
 0x142   : > { %426 = dma.vmem_to_hbm [thread:$0]  (%p731_p12), %s797_s26, 128, %s795_s9, %s289_s10  }
 0x143 PF: > { %s314_s18 = sand.u32 1, %s598_s12   ;;  %p857_p10 = scmp.ne.s32.totalorder %s847_s19, 0 }
 0x144   : > { %p858_p13 = scmp.ge.s32.totalorder %s610_s15, 2  ;;  %s315_s20 = scalar_lea.sflag [#allocation4], %s314_s18 }
 0x146   : > { %p437_p3 = pnand %p858_p13, %p857_p10 }
 0x148   : > { %593 = dma.done.wait (!%p437_p3), %s315_s20, 128  }
 0x149   : > { %595 = vsyncadd (!%p437_p3), %s315_s20, 4294967168  ;;  %p17_p7 = scmp.ge.s32.totalorder %s696_s24, 4   ;;  %s859_s12 = smov %s602_s13 }
 0x14a   : > { %s860_s13 = smov %s606_s14  ;;  %s861_s14 = smov %s727_s17 }
 0x14b   : > { %s862_s15 = smov %s696_s24  ;;  %19 = sbr.rel (!%p17_p7) target bundleno = 6 (0x6), region = 81 }
 0x152   :  { %320 = vsyncpa [#allocation3], 1 }
 0x153   :  { %322 = vsyncpa [#allocation3 + $0x1], 1 }
 0x154   :  { %323 = vsyncpa [#allocation6], 1 }
 0x155   :  { %324 = vsyncpa [#allocation4], 1 }
 0x156   :  { %326 = vsyncpa [#allocation4 + $0x1], 1 }

</bundles_post_ra>
